<compile_context>
chip_gen: v7x
topology: tpu7x:2x2x1
jax: 0.10.0
libtpu: 0.0.40
codegen_flags: <defaults>
</compile_context>

<pallas_src>
import functools

import jax
import jax.numpy as jnp
from jax.experimental import pallas as pl
from jax.experimental.pallas import tpu as pltpu


CP = 128  # lane-padded channel width (all layer in/out dims padded to this)


def _round_up(v, m):
    return (v + m - 1) // m * m


# ----------------------------- fused Pallas kernel ------------------------------ #

def _gcn_fused_kernel(thr2_ref, coord_ref, coord_t_ref, x_ref,
                      w1_ref, b1_ref, w2_ref, b2_ref, w3_ref, b3_ref,
                      out_ref, *, n_true, c1, c2, c3):
    f32 = jnp.float32
    npad = x_ref.shape[0]
    thr2 = thr2_ref[0, 0]

    # ---- contact graph on the VPU: d2 = (xi-xj)^2 + (yi-yj)^2 + (zi-zj)^2 < thr^2 ----
    cx = coord_ref[:, 0:1]
    cy = coord_ref[:, 1:2]
    cz = coord_ref[:, 2:3]                      # (NP, 1)
    tx = coord_t_ref[0:1, :]
    ty = coord_t_ref[1:2, :]
    tz = coord_t_ref[2:3, :]                    # (1, NP)  (transposed in the wrapper, no XLU)
    dx = cx - tx
    dy = cy - ty
    dz = cz - tz
    d2 = dx * dx + dy * dy + dz * dz
    adj_b = d2 < thr2                           # diagonal: d2_ii = 0 < thr^2 -> self-loops free
    adj = adj_b.astype(f32)

    def gat(x_in, w_ref, b_ref, c_out):
        # One bf16 MXU matmul gives h (cols < c_out) plus both folded attention scores.
        # Score/pad columns of h are NOT zeroed: the next layer's folded weight has zero rows
        # there, so they are annihilated by the next matmul (and sliced off after the last one).
        h = jnp.dot(x_in.astype(jnp.bfloat16), w_ref[...],
                    preferred_element_type=f32)                           # (NP, CP) f32
        s_src = h[:, c_out:c_out + 1]                                     # (NP, 1) a_src.h_j
        s_dst = h[:, c_out + 1:c_out + 2]                                 # (NP, 1) a_dst.h_i
        e = s_dst + s_src.T                                               # e[i, j]: edge j -> i
        e = jnp.where(e > 0, e, 0.2 * e)                                  # LeakyReLU(0.2)
        # Masked softmax: masked row max, clamp exponent (exact for unmasked entries),
        # EUP reciprocal instead of a VALU divide.
        m = jnp.max(jnp.where(adj_b, e, -jnp.inf), axis=-1, keepdims=True)
        p = jnp.exp(jnp.minimum(e - m, 0.0)) * adj
        inv = pl.reciprocal(jnp.sum(p, axis=-1, keepdims=True), approx=True)
        alpha = (p * inv).astype(jnp.bfloat16)
        return jnp.dot(alpha, h.astype(jnp.bfloat16),
                       preferred_element_type=f32) + b_ref[...]

    h = jnp.maximum(gat(x_ref[...], w1_ref, b1_ref, c1), 0.0)             # relu(conv1)
    h = jnp.maximum(gat(h, w2_ref, b2_ref, c2), 0.0)                      # relu(conv2)
    h = gat(h, w3_ref, b3_ref, c3)                                        # conv3 (thr folded in W3)

    # mean over the *true* nodes only (padded rows masked out)
    row_valid = (jax.lax.broadcasted_iota(jnp.int32, (npad, 1), 0) < n_true).astype(f32)
    out_ref[...] = jnp.sum(h * row_valid, axis=0, keepdims=True) * (1.0 / n_true)


# ------------------------------ JAX wrapper -------------------------------- #

class GCNModelPallas:
    """JAX/Pallas reimplementation of GCNModel's forward pass (single fused kernel)."""

    def __init__(self, in_channels, hidden_channels, out_channels, key):
        dims = [(in_channels, hidden_channels * 2),
                (hidden_channels * 2, hidden_channels),
                (hidden_channels, out_channels)]
        assert all(cin <= CP and cout + 2 <= CP for cin, cout in dims)
        self.dims = dims
        self.out_channels = out_channels
        self.threshold_distance = jnp.float32(10.0)    # nn.Parameter(10.0)
        self.cansu = jnp.float32(0.75)                 # nn.Parameter(0.75)
        thr = float(self.threshold_distance * self.cansu)

        self.layers = []
        for li, (cin, cout) in enumerate(dims):
            kw, ks, kd = jax.random.split(jax.random.fold_in(key, li), 3)
            w = jax.random.normal(kw, (cin, cout), jnp.float32) * 0.1
            a_src = jax.random.normal(ks, (cout,), jnp.float32) * 0.1
            a_dst = jax.random.normal(kd, (cout,), jnp.float32) * 0.1
            b = jnp.zeros((cout,), jnp.float32)
            # Fold attention vectors into the lane-padded weight; fold the final `* threshold`
            # into the last layer's valid output columns (bias is zero -> exact fold).
            scale = thr if li == len(dims) - 1 else 1.0
            w_aug = jnp.zeros((CP, CP), jnp.float32)
            w_aug = w_aug.at[:cin, :cout].set(w * scale)
            w_aug = w_aug.at[:cin, cout].set(w @ a_src)
            w_aug = w_aug.at[:cin, cout + 1].set(w @ a_dst)
            b_pad = jnp.zeros((1, CP), jnp.float32).at[0, :cout].set(b * scale)
            self.layers.append(dict(w=w_aug.astype(jnp.bfloat16), b=b_pad, cout=cout))

    def __call__(self, x, coord):
        n, cin = x.shape
        np_ = _round_up(max(n, 8), 8)
        thr = self.threshold_distance * self.cansu
        thr2 = (thr * thr).reshape(1, 1)                                  # (1, 1) SMEM scalar

        # pad nodes: zero features, far-away coords (self-loop only, excluded from the mean)
        x_pad = jnp.zeros((np_, CP), jnp.float32).at[:n, :cin].set(x)
        coord_pad = jnp.zeros((np_, 3), jnp.float32).at[:n, :].set(coord.astype(jnp.float32))
        pad_rows = np_ - n
        if pad_rows:
            sentinel = (1e6 * (1.0 + jnp.arange(pad_rows, dtype=jnp.float32)))[:, None]
            coord_pad = coord_pad.at[n:, :].set(jnp.broadcast_to(sentinel, (pad_rows, 3)))
        coord_t = coord_pad.T                                             # (3, NP)

        p1, p2, p3 = self.layers
        kernel = functools.partial(_gcn_fused_kernel, n_true=n,
                                   c1=p1['cout'], c2=p2['cout'], c3=p3['cout'])

        full = lambda shape: pl.BlockSpec(shape, lambda i: (0,) * len(shape))
        out = pl.pallas_call(
            kernel,
            out_shape=jax.ShapeDtypeStruct((1, CP), jnp.float32),
            grid=(1,),
            in_specs=[
                pl.BlockSpec((1, 1), lambda i: (0, 0), memory_space=pltpu.SMEM),  # threshold^2
                full((np_, 3)),      # coord
                full((3, np_)),      # coord^T
                full((np_, CP)),     # x (lane-padded)
                full((CP, CP)), full((1, CP)),   # W1_aug (bf16), b1
                full((CP, CP)), full((1, CP)),   # W2_aug, b2
                full((CP, CP)), full((1, CP)),   # W3_aug (thr folded), b3
            ],
            out_specs=pl.BlockSpec((1, CP), lambda i: (0, 0)),
            compiler_params=pltpu.CompilerParams(
                dimension_semantics=("arbitrary",)),
        )(thr2, coord_pad, coord_t, x_pad,
          p1['w'], p1['b'], p2['w'], p2['b'], p3['w'], p3['b'])

        return out[:, :self.out_channels]                                 # (1, out_channels)


if __name__ == "__main__":
    key = jax.random.PRNGKey(0)
    k_x, k_c, k_p = jax.random.split(key, 3)

    N, IN_CH, HIDDEN, OUT_CH = 16, 8, 16, 4
    x = jax.random.normal(k_x, (N, IN_CH), jnp.float32)
    coord = jax.random.normal(k_c, (N, 3), jnp.float32) * 3.0             # residue coordinates

    model = GCNModelPallas(IN_CH, HIDDEN, OUT_CH, k_p)
    out = jax.block_until_ready(model(x, coord))
    assert out.shape == (1, OUT_CH), out.shape
    assert bool(jnp.all(jnp.isfinite(out)))
    print("KERNEL_OK")
</pallas_src>

<mosaic_0001>
module attributes {stable_mosaic.version = 11 : i64} {
  func.func @_gcn_fused_kernel(%arg0: i32, %arg1: memref<1x1xf32, #tpu.memory_space<smem>>, %arg2: memref<16x3xf32, #tpu.memory_space<vmem>>, %arg3: memref<3x16xf32, #tpu.memory_space<vmem>>, %arg4: memref<16x128xf32, #tpu.memory_space<vmem>>, %arg5: memref<128x128xbf16, #tpu.memory_space<vmem>>, %arg6: memref<1x128xf32, #tpu.memory_space<vmem>>, %arg7: memref<128x128xbf16, #tpu.memory_space<vmem>>, %arg8: memref<1x128xf32, #tpu.memory_space<vmem>>, %arg9: memref<128x128xbf16, #tpu.memory_space<vmem>>, %arg10: memref<1x128xf32, #tpu.memory_space<vmem>>, %arg11: memref<1x128xf32, #tpu.memory_space<vmem>>) attributes {dimension_semantics = [#tpu.dimension_semantics<arbitrary>], iteration_bounds = array<i64: 1>, scalar_prefetch = 0 : i64, scratch_operands = 0 : i64, tpu.core_type = #tpu.core_type<tc>, window_params = [{transform_indices = @transform_0, window_bounds = array<i64: 1, 1>}, {pipeline_mode = #tpu.pipeline_mode<synchronous>, transform_indices = @transform_1, window_bounds = array<i64: 16, 3>}, {pipeline_mode = #tpu.pipeline_mode<synchronous>, transform_indices = @transform_2, window_bounds = array<i64: 3, 16>}, {pipeline_mode = #tpu.pipeline_mode<synchronous>, transform_indices = @transform_3, window_bounds = array<i64: 16, 128>}, {pipeline_mode = #tpu.pipeline_mode<synchronous>, transform_indices = @transform_4, window_bounds = array<i64: 128, 128>}, {pipeline_mode = #tpu.pipeline_mode<synchronous>, transform_indices = @transform_5, window_bounds = array<i64: 1, 128>}, {pipeline_mode = #tpu.pipeline_mode<synchronous>, transform_indices = @transform_6, window_bounds = array<i64: 128, 128>}, {pipeline_mode = #tpu.pipeline_mode<synchronous>, transform_indices = @transform_7, window_bounds = array<i64: 1, 128>}, {pipeline_mode = #tpu.pipeline_mode<synchronous>, transform_indices = @transform_8, window_bounds = array<i64: 128, 128>}, {pipeline_mode = #tpu.pipeline_mode<synchronous>, transform_indices = @transform_9, window_bounds = array<i64: 1, 128>}, {pipeline_mode = #tpu.pipeline_mode<synchronous>, transform_indices = @transform_10, window_bounds = array<i64: 1, 128>}]} {
    %c0 = arith.constant 0 : index
    %c0_0 = arith.constant 0 : index
    %0 = memref.load %arg1[%c0, %c0_0] : memref<1x1xf32, #tpu.memory_space<smem>>
    %c0_1 = arith.constant 0 : index
    %c0_2 = arith.constant 0 : index
    %1 = vector.load %arg2[%c0_1, %c0_2] : memref<16x3xf32, #tpu.memory_space<vmem>>, vector<16x1xf32>
    %c0_3 = arith.constant 0 : index
    %c1 = arith.constant 1 : index
    %2 = vector.load %arg2[%c0_3, %c1] : memref<16x3xf32, #tpu.memory_space<vmem>>, vector<16x1xf32>
    %c0_4 = arith.constant 0 : index
    %c2 = arith.constant 2 : index
    %3 = vector.load %arg2[%c0_4, %c2] : memref<16x3xf32, #tpu.memory_space<vmem>>, vector<16x1xf32>
    %c0_5 = arith.constant 0 : index
    %c0_6 = arith.constant 0 : index
    %4 = vector.load %arg3[%c0_5, %c0_6] : memref<3x16xf32, #tpu.memory_space<vmem>>, vector<1x16xf32>
    %c1_7 = arith.constant 1 : index
    %c0_8 = arith.constant 0 : index
    %5 = vector.load %arg3[%c1_7, %c0_8] : memref<3x16xf32, #tpu.memory_space<vmem>>, vector<1x16xf32>
    %c2_9 = arith.constant 2 : index
    %c0_10 = arith.constant 0 : index
    %6 = vector.load %arg3[%c2_9, %c0_10] : memref<3x16xf32, #tpu.memory_space<vmem>>, vector<1x16xf32>
    %7 = vector.broadcast %1 : vector<16x1xf32> to vector<16x16xf32>
    %8 = vector.broadcast %4 : vector<1x16xf32> to vector<16x16xf32>
    %9 = arith.subf %7, %8 : vector<16x16xf32>
    %10 = vector.broadcast %2 : vector<16x1xf32> to vector<16x16xf32>
    %11 = vector.broadcast %5 : vector<1x16xf32> to vector<16x16xf32>
    %12 = arith.subf %10, %11 : vector<16x16xf32>
    %13 = vector.broadcast %3 : vector<16x1xf32> to vector<16x16xf32>
    %14 = vector.broadcast %6 : vector<1x16xf32> to vector<16x16xf32>
    %15 = arith.subf %13, %14 : vector<16x16xf32>
    %16 = arith.mulf %9, %9 : vector<16x16xf32>
    %17 = arith.mulf %12, %12 : vector<16x16xf32>
    %18 = arith.addf %16, %17 : vector<16x16xf32>
    %19 = arith.mulf %15, %15 : vector<16x16xf32>
    %20 = arith.addf %18, %19 : vector<16x16xf32>
    %21 = vector.broadcast %0 : f32 to vector<16x16xf32>
    %22 = arith.cmpf olt, %20, %21 : vector<16x16xf32>
    %23 = arith.extui %22 : vector<16x16xi1> to vector<16x16xi32>
    %24 = arith.sitofp %23 : vector<16x16xi32> to vector<16x16xf32>
    %c0_11 = arith.constant 0 : index
    %c0_12 = arith.constant 0 : index
    %25 = vector.load %arg4[%c0_11, %c0_12] : memref<16x128xf32, #tpu.memory_space<vmem>>, vector<16x128xf32>
    %26 = arith.truncf %25 : vector<16x128xf32> to vector<16x128xbf16>
    %c0_13 = arith.constant 0 : index
    %c0_14 = arith.constant 0 : index
    %27 = vector.load %arg5[%c0_13, %c0_14] : memref<128x128xbf16, #tpu.memory_space<vmem>>, vector<128x128xbf16>
    %cst = arith.constant dense<0.000000e+00> : vector<16x128xf32>
    %28 = tpu.matmul %26, %27, %cst {dimension_numbers = #tpu.dot_dimension_numbers<[1], [0], [0], [1], [0, 0, 1, 1], [], []>} : vector<16x128xbf16>, vector<128x128xbf16>, vector<16x128xf32> -> vector<16x128xf32>
    %29 = vector.extract_strided_slice %28 {offsets = [0, 32], sizes = [16, 1], strides = [1, 1]} : vector<16x128xf32> to vector<16x1xf32>
    %30 = vector.extract_strided_slice %28 {offsets = [0, 33], sizes = [16, 1], strides = [1, 1]} : vector<16x128xf32> to vector<16x1xf32>
    %31 = tpu.transpose %29, [1, 0] : vector<16x1xf32> -> vector<1x16xf32>
    %32 = vector.broadcast %30 : vector<16x1xf32> to vector<16x16xf32>
    %33 = vector.broadcast %31 : vector<1x16xf32> to vector<16x16xf32>
    %34 = arith.addf %32, %33 : vector<16x16xf32>
    %cst_15 = arith.constant 0.000000e+00 : f32
    %35 = vector.broadcast %cst_15 : f32 to vector<16x16xf32>
    %36 = arith.cmpf ogt, %34, %35 : vector<16x16xf32>
    %cst_16 = arith.constant 2.000000e-01 : f32
    %37 = vector.broadcast %cst_16 : f32 to vector<16x16xf32>
    %38 = arith.mulf %37, %34 : vector<16x16xf32>
    %39 = arith.select %36, %34, %38 : vector<16x16xi1>, vector<16x16xf32>
    %cst_17 = arith.constant 0xFF800000 : f32
    %40 = vector.broadcast %cst_17 : f32 to vector<16x16xf32>
    %41 = arith.select %22, %39, %40 : vector<16x16xi1>, vector<16x16xf32>
    %cst_18 = arith.constant dense<0xFF800000> : vector<16xf32>
    %42 = vector.multi_reduction <maximumf>, %41, %cst_18 [1] : vector<16x16xf32> to vector<16xf32>
    %43 = vector.shape_cast %42 : vector<16xf32> to vector<16x1xf32>
    %44 = vector.broadcast %43 : vector<16x1xf32> to vector<16x16xf32>
    %45 = arith.subf %39, %44 : vector<16x16xf32>
    %cst_19 = arith.constant 0.000000e+00 : f32
    %46 = vector.broadcast %cst_19 : f32 to vector<16x16xf32>
    %47 = arith.minimumf %45, %46 : vector<16x16xf32>
    %48 = math.exp %47 : vector<16x16xf32>
    %49 = arith.mulf %48, %24 : vector<16x16xf32>
    %cst_20 = arith.constant dense<0.000000e+00> : vector<16xf32>
    %50 = vector.multi_reduction <add>, %49, %cst_20 [1] : vector<16x16xf32> to vector<16xf32>
    %51 = vector.shape_cast %50 : vector<16xf32> to vector<16x1xf32>
    %52 = tpu.reciprocal %51 {approx = true} : vector<16x1xf32> -> vector<16x1xf32>
    %53 = vector.broadcast %52 : vector<16x1xf32> to vector<16x16xf32>
    %54 = arith.mulf %49, %53 : vector<16x16xf32>
    %55 = arith.truncf %54 : vector<16x16xf32> to vector<16x16xbf16>
    %56 = arith.truncf %28 : vector<16x128xf32> to vector<16x128xbf16>
    %cst_21 = arith.constant dense<0.000000e+00> : vector<16x128xf32>
    %57 = tpu.matmul %55, %56, %cst_21 {dimension_numbers = #tpu.dot_dimension_numbers<[1], [0], [0], [1], [0, 0, 1, 1], [], []>} : vector<16x16xbf16>, vector<16x128xbf16>, vector<16x128xf32> -> vector<16x128xf32>
    %c0_22 = arith.constant 0 : index
    %c0_23 = arith.constant 0 : index
    %58 = vector.load %arg6[%c0_22, %c0_23] : memref<1x128xf32, #tpu.memory_space<vmem>>, vector<1x128xf32>
    %59 = vector.broadcast %58 : vector<1x128xf32> to vector<16x128xf32>
    %60 = arith.addf %57, %59 : vector<16x128xf32>
    %cst_24 = arith.constant 0.000000e+00 : f32
    %61 = vector.broadcast %cst_24 : f32 to vector<16x128xf32>
    %62 = arith.maximumf %60, %61 : vector<16x128xf32>
    %63 = arith.truncf %62 : vector<16x128xf32> to vector<16x128xbf16>
    %c0_25 = arith.constant 0 : index
    %c0_26 = arith.constant 0 : index
    %64 = vector.load %arg7[%c0_25, %c0_26] : memref<128x128xbf16, #tpu.memory_space<vmem>>, vector<128x128xbf16>
    %cst_27 = arith.constant dense<0.000000e+00> : vector<16x128xf32>
    %65 = tpu.matmul %63, %64, %cst_27 {dimension_numbers = #tpu.dot_dimension_numbers<[1], [0], [0], [1], [0, 0, 1, 1], [], []>} : vector<16x128xbf16>, vector<128x128xbf16>, vector<16x128xf32> -> vector<16x128xf32>
    %66 = vector.extract_strided_slice %65 {offsets = [0, 16], sizes = [16, 1], strides = [1, 1]} : vector<16x128xf32> to vector<16x1xf32>
    %67 = vector.extract_strided_slice %65 {offsets = [0, 17], sizes = [16, 1], strides = [1, 1]} : vector<16x128xf32> to vector<16x1xf32>
    %68 = tpu.transpose %66, [1, 0] : vector<16x1xf32> -> vector<1x16xf32>
    %69 = vector.broadcast %67 : vector<16x1xf32> to vector<16x16xf32>
    %70 = vector.broadcast %68 : vector<1x16xf32> to vector<16x16xf32>
    %71 = arith.addf %69, %70 : vector<16x16xf32>
    %cst_28 = arith.constant 0.000000e+00 : f32
    %72 = vector.broadcast %cst_28 : f32 to vector<16x16xf32>
    %73 = arith.cmpf ogt, %71, %72 : vector<16x16xf32>
    %cst_29 = arith.constant 2.000000e-01 : f32
    %74 = vector.broadcast %cst_29 : f32 to vector<16x16xf32>
    %75 = arith.mulf %74, %71 : vector<16x16xf32>
    %76 = arith.select %73, %71, %75 : vector<16x16xi1>, vector<16x16xf32>
    %cst_30 = arith.constant 0xFF800000 : f32
    %77 = vector.broadcast %cst_30 : f32 to vector<16x16xf32>
    %78 = arith.select %22, %76, %77 : vector<16x16xi1>, vector<16x16xf32>
    %cst_31 = arith.constant dense<0xFF800000> : vector<16xf32>
    %79 = vector.multi_reduction <maximumf>, %78, %cst_31 [1] : vector<16x16xf32> to vector<16xf32>
    %80 = vector.shape_cast %79 : vector<16xf32> to vector<16x1xf32>
    %81 = vector.broadcast %80 : vector<16x1xf32> to vector<16x16xf32>
    %82 = arith.subf %76, %81 : vector<16x16xf32>
    %cst_32 = arith.constant 0.000000e+00 : f32
    %83 = vector.broadcast %cst_32 : f32 to vector<16x16xf32>
    %84 = arith.minimumf %82, %83 : vector<16x16xf32>
    %85 = math.exp %84 : vector<16x16xf32>
    %86 = arith.mulf %85, %24 : vector<16x16xf32>
    %cst_33 = arith.constant dense<0.000000e+00> : vector<16xf32>
    %87 = vector.multi_reduction <add>, %86, %cst_33 [1] : vector<16x16xf32> to vector<16xf32>
    %88 = vector.shape_cast %87 : vector<16xf32> to vector<16x1xf32>
    %89 = tpu.reciprocal %88 {approx = true} : vector<16x1xf32> -> vector<16x1xf32>
    %90 = vector.broadcast %89 : vector<16x1xf32> to vector<16x16xf32>
    %91 = arith.mulf %86, %90 : vector<16x16xf32>
    %92 = arith.truncf %91 : vector<16x16xf32> to vector<16x16xbf16>
    %93 = arith.truncf %65 : vector<16x128xf32> to vector<16x128xbf16>
    %cst_34 = arith.constant dense<0.000000e+00> : vector<16x128xf32>
    %94 = tpu.matmul %92, %93, %cst_34 {dimension_numbers = #tpu.dot_dimension_numbers<[1], [0], [0], [1], [0, 0, 1, 1], [], []>} : vector<16x16xbf16>, vector<16x128xbf16>, vector<16x128xf32> -> vector<16x128xf32>
    %c0_35 = arith.constant 0 : index
    %c0_36 = arith.constant 0 : index
    %95 = vector.load %arg8[%c0_35, %c0_36] : memref<1x128xf32, #tpu.memory_space<vmem>>, vector<1x128xf32>
    %96 = vector.broadcast %95 : vector<1x128xf32> to vector<16x128xf32>
    %97 = arith.addf %94, %96 : vector<16x128xf32>
    %cst_37 = arith.constant 0.000000e+00 : f32
    %98 = vector.broadcast %cst_37 : f32 to vector<16x128xf32>
    %99 = arith.maximumf %97, %98 : vector<16x128xf32>
    %100 = arith.truncf %99 : vector<16x128xf32> to vector<16x128xbf16>
    %c0_38 = arith.constant 0 : index
    %c0_39 = arith.constant 0 : index
    %101 = vector.load %arg9[%c0_38, %c0_39] : memref<128x128xbf16, #tpu.memory_space<vmem>>, vector<128x128xbf16>
    %cst_40 = arith.constant dense<0.000000e+00> : vector<16x128xf32>
    %102 = tpu.matmul %100, %101, %cst_40 {dimension_numbers = #tpu.dot_dimension_numbers<[1], [0], [0], [1], [0, 0, 1, 1], [], []>} : vector<16x128xbf16>, vector<128x128xbf16>, vector<16x128xf32> -> vector<16x128xf32>
    %103 = vector.extract_strided_slice %102 {offsets = [0, 4], sizes = [16, 1], strides = [1, 1]} : vector<16x128xf32> to vector<16x1xf32>
    %104 = vector.extract_strided_slice %102 {offsets = [0, 5], sizes = [16, 1], strides = [1, 1]} : vector<16x128xf32> to vector<16x1xf32>
    %105 = tpu.transpose %103, [1, 0] : vector<16x1xf32> -> vector<1x16xf32>
    %106 = vector.broadcast %104 : vector<16x1xf32> to vector<16x16xf32>
    %107 = vector.broadcast %105 : vector<1x16xf32> to vector<16x16xf32>
    %108 = arith.addf %106, %107 : vector<16x16xf32>
    %cst_41 = arith.constant 0.000000e+00 : f32
    %109 = vector.broadcast %cst_41 : f32 to vector<16x16xf32>
    %110 = arith.cmpf ogt, %108, %109 : vector<16x16xf32>
    %cst_42 = arith.constant 2.000000e-01 : f32
    %111 = vector.broadcast %cst_42 : f32 to vector<16x16xf32>
    %112 = arith.mulf %111, %108 : vector<16x16xf32>
    %113 = arith.select %110, %108, %112 : vector<16x16xi1>, vector<16x16xf32>
    %cst_43 = arith.constant 0xFF800000 : f32
    %114 = vector.broadcast %cst_43 : f32 to vector<16x16xf32>
    %115 = arith.select %22, %113, %114 : vector<16x16xi1>, vector<16x16xf32>
    %cst_44 = arith.constant dense<0xFF800000> : vector<16xf32>
    %116 = vector.multi_reduction <maximumf>, %115, %cst_44 [1] : vector<16x16xf32> to vector<16xf32>
    %117 = vector.shape_cast %116 : vector<16xf32> to vector<16x1xf32>
    %118 = vector.broadcast %117 : vector<16x1xf32> to vector<16x16xf32>
    %119 = arith.subf %113, %118 : vector<16x16xf32>
    %cst_45 = arith.constant 0.000000e+00 : f32
    %120 = vector.broadcast %cst_45 : f32 to vector<16x16xf32>
    %121 = arith.minimumf %119, %120 : vector<16x16xf32>
    %122 = math.exp %121 : vector<16x16xf32>
    %123 = arith.mulf %122, %24 : vector<16x16xf32>
    %cst_46 = arith.constant dense<0.000000e+00> : vector<16xf32>
    %124 = vector.multi_reduction <add>, %123, %cst_46 [1] : vector<16x16xf32> to vector<16xf32>
    %125 = vector.shape_cast %124 : vector<16xf32> to vector<16x1xf32>
    %126 = tpu.reciprocal %125 {approx = true} : vector<16x1xf32> -> vector<16x1xf32>
    %127 = vector.broadcast %126 : vector<16x1xf32> to vector<16x16xf32>
    %128 = arith.mulf %123, %127 : vector<16x16xf32>
    %129 = arith.truncf %128 : vector<16x16xf32> to vector<16x16xbf16>
    %130 = arith.truncf %102 : vector<16x128xf32> to vector<16x128xbf16>
    %cst_47 = arith.constant dense<0.000000e+00> : vector<16x128xf32>
    %131 = tpu.matmul %129, %130, %cst_47 {dimension_numbers = #tpu.dot_dimension_numbers<[1], [0], [0], [1], [0, 0, 1, 1], [], []>} : vector<16x16xbf16>, vector<16x128xbf16>, vector<16x128xf32> -> vector<16x128xf32>
    %c0_48 = arith.constant 0 : index
    %c0_49 = arith.constant 0 : index
    %132 = vector.load %arg10[%c0_48, %c0_49] : memref<1x128xf32, #tpu.memory_space<vmem>>, vector<1x128xf32>
    %133 = vector.broadcast %132 : vector<1x128xf32> to vector<16x128xf32>
    %134 = arith.addf %131, %133 : vector<16x128xf32>
    %135 = tpu.iota {dimensions = array<i32: 0>} : vector<16x1xi32>
    %c16_i32 = arith.constant 16 : i32
    %136 = vector.broadcast %c16_i32 : i32 to vector<16x1xi32>
    %137 = arith.cmpi slt, %135, %136 : vector<16x1xi32>
    %138 = arith.extui %137 : vector<16x1xi1> to vector<16x1xi32>
    %139 = arith.sitofp %138 : vector<16x1xi32> to vector<16x1xf32>
    %140 = vector.broadcast %139 : vector<16x1xf32> to vector<16x128xf32>
    %141 = arith.mulf %134, %140 : vector<16x128xf32>
    %cst_50 = arith.constant dense<0.000000e+00> : vector<128xf32>
    %142 = vector.multi_reduction <add>, %141, %cst_50 [0] : vector<16x128xf32> to vector<128xf32>
    %143 = vector.shape_cast %142 : vector<128xf32> to vector<1x128xf32>
    %cst_51 = arith.constant 6.250000e-02 : f32
    %144 = vector.broadcast %cst_51 : f32 to vector<1x128xf32>
    %145 = arith.mulf %143, %144 : vector<1x128xf32>
    %c0_52 = arith.constant 0 : index
    %c0_53 = arith.constant 0 : index
    %146 = vector.load %arg11[%c0_52, %c0_53] : memref<1x128xf32, #tpu.memory_space<vmem>>, vector<1x128xf32>
    tpu.vector_store %arg11[%c0_52, %c0_53], %145 {strides = array<i32>} : memref<1x128xf32, #tpu.memory_space<vmem>>, vector<1x128xf32>,
    return
  }
  func.func @transform_0(%arg0: i32) -> (i32, i32) {
    %c0_i32 = arith.constant 0 : i32
    %c0_i32_0 = arith.constant 0 : i32
    %c0_i32_1 = arith.constant 0 : i32
    return %c0_i32, %c0_i32_0 : i32, i32
  }
  func.func @transform_1(%arg0: i32) -> (i32, i32) {
    %c0_i32 = arith.constant 0 : i32
    %c0_i32_0 = arith.constant 0 : i32
    %c0_i32_1 = arith.constant 0 : i32
    return %c0_i32, %c0_i32_0 : i32, i32
  }
  func.func @transform_2(%arg0: i32) -> (i32, i32) {
    %c0_i32 = arith.constant 0 : i32
    %c0_i32_0 = arith.constant 0 : i32
    %c0_i32_1 = arith.constant 0 : i32
    return %c0_i32, %c0_i32_0 : i32, i32
  }
  func.func @transform_3(%arg0: i32) -> (i32, i32) {
    %c0_i32 = arith.constant 0 : i32
    %c0_i32_0 = arith.constant 0 : i32
    %c0_i32_1 = arith.constant 0 : i32
    return %c0_i32, %c0_i32_0 : i32, i32
  }
  func.func @transform_4(%arg0: i32) -> (i32, i32) {
    %c0_i32 = arith.constant 0 : i32
    %c0_i32_0 = arith.constant 0 : i32
    %c0_i32_1 = arith.constant 0 : i32
    return %c0_i32, %c0_i32_0 : i32, i32
  }
  func.func @transform_5(%arg0: i32) -> (i32, i32) {
    %c0_i32 = arith.constant 0 : i32
    %c0_i32_0 = arith.constant 0 : i32
    %c0_i32_1 = arith.constant 0 : i32
    return %c0_i32, %c0_i32_0 : i32, i32
  }
  func.func @transform_6(%arg0: i32) -> (i32, i32) {
    %c0_i32 = arith.constant 0 : i32
    %c0_i32_0 = arith.constant 0 : i32
    %c0_i32_1 = arith.constant 0 : i32
    return %c0_i32, %c0_i32_0 : i32, i32
  }
  func.func @transform_7(%arg0: i32) -> (i32, i32) {
    %c0_i32 = arith.constant 0 : i32
    %c0_i32_0 = arith.constant 0 : i32
    %c0_i32_1 = arith.constant 0 : i32
    return %c0_i32, %c0_i32_0 : i32, i32
  }
  func.func @transform_8(%arg0: i32) -> (i32, i32) {
    %c0_i32 = arith.constant 0 : i32
    %c0_i32_0 = arith.constant 0 : i32
    %c0_i32_1 = arith.constant 0 : i32
    return %c0_i32, %c0_i32_0 : i32, i32
  }
  func.func @transform_9(%arg0: i32) -> (i32, i32) {
    %c0_i32 = arith.constant 0 : i32
    %c0_i32_0 = arith.constant 0 : i32
    %c0_i32_1 = arith.constant 0 : i32
    return %c0_i32, %c0_i32_0 : i32, i32
  }
  func.func @transform_10(%arg0: i32) -> (i32, i32) {
    %c0_i32 = arith.constant 0 : i32
    %c0_i32_0 = arith.constant 0 : i32
    %c0_i32_1 = arith.constant 0 : i32
    return %c0_i32, %c0_i32_0 : i32, i32
  }
}

</mosaic_0001>

<bundles_post_ra>
// kernel: tpu_custom_call.1
= control target key start
LH: loop header
LB: loop body
LE: loop exit
PB: predicated region body
PF: predicated region fallthrough
CT: control target
= control target key end

     0   :  { %16 = vsyncpa [#allocation4], 0  ;;  %s1508_s0 = inlined_call_operand.<no memory space> [shape: f32[1,1], index: 0, kind: input, shape index: {}]   ;;  %s1509_s1 = inlined_call_operand.vmem [shape: f32[16,3], index: 1, kind: input, shape index: {}]   ;;  %s1510_s2 = inlined_call_operand.vmem [shape: f32[3,16], index: 2, kind: input, shape index: {}]   ;;  %s1511_s3 = inlined_call_operand.vmem [shape: f32[16,128], index: 3, kind: input, shape index: {}]   ;;  %s1512_s4 = inlined_call_operand.hbm [shape: bf16[128,128], index: 4, kind: input, shape index: {}]   ;;  %s1513_s5 = inlined_call_operand.vmem [shape: f32[1,128], index: 5, kind: input, shape index: {}]   ;;  %s1514_s6 = inlined_call_operand.hbm [shape: bf16[128,128], index: 6, kind: input, shape index: {}]   ;;  %s1515_s7 = inlined_call_operand.vmem [shape: f32[1,128], index: 7, kind: input, shape index: {}]   ;;  %s1516_s8 = inlined_call_operand.hbm [shape: bf16[128,128], index: 8, kind: input, shape index: {}]   ;;  %s1517_s9 = inlined_call_operand.vmem [shape: f32[1,128], index: 9, kind: input, shape index: {}]   ;;  %s1518_s10 = inlined_call_operand.hbm [shape: f32[1,128], index: 10, kind: output, shape index: {}]  }
   0x1   :  { %17 = vsyncpa [#allocation7], 0 }
   0x2   :  { %18 = vsyncpa [#allocation5], 0  ;;  %s1244_s13 = smov [#allocation6]   ;;  %s1245_s15 = smov [#allocation3]  }
   0x3   :  { %s46_s14 = sshll.u32 %s1244_s13, 4  ;;  %s32_s16 = sshll.u32 %s1245_s15, 4  ;;  %s47_s14 = int_to_ptr.vmem [resolvable:$true] %s46_s14  ;;  %s1316_s16 = int_to_ptr.vmem [resolvable:$true] %s32_s16 }
   0x4   :  { %s1150_s19 = scalar_lea.hbm %s1514_s6, 1024 }
   0x5   :  { %p1151_p0 = scmp.ne.s32.totalorder %s1514_s6, %s1150_s19  ;;  %p1154_p1 = scmp.lt.u32.totalorder %s1150_s19, %s1514_s6 }
   0x7   :  { %p1156_p2 = pnand %p1154_p1, %p1151_p0 }
   0x9   :  { %1159 = shalt.err (!%p1156_p2)
}
   0xa   :  { %s1160_s24 = scalar_lea.vmem %s47_s14, 1024  ;;  %p1165_p4 = scmp.lt.s32.totalorder %s47_s14, %s47_s14 }
   0xb   :  { %p1161_p3 = scmp.ne.s32.totalorder %s47_s14, %s1160_s24  ;;  %p1166_p5 = scmp.lt.s32.totalorder %s1160_s24, %s1160_s24 }
   0xd   :  { %p1167_p6 = por %p1166_p5, %p1165_p4 }
   0xf   :  { %p1168_p7 = pnand %p1167_p6, %p1161_p3 }
  0x11   :  { %1171 = shalt.err (!%p1168_p7)
}
  0x12   :  { %s1246_s25 = smov 64   ;;  %s1247_s26 = smov 4  }
  0x13   :  { %52 = dma.hbm_to_vmem [thread:$0]  %s1514_s6, 1024, %s47_s14, [#allocation7], %s1246_s25, %s1246_s25, %s1247_s26  }
  0x14   :  { %s1172_s11 = scalar_lea.hbm %s1512_s4, 1024 }
  0x15   :  { %p1173_p8 = scmp.ne.s32.totalorder %s1512_s4, %s1172_s11  ;;  %p1176_p9 = scmp.lt.u32.totalorder %s1172_s11, %s1512_s4 }
  0x17   :  { %p1178_p10 = pnand %p1176_p9, %p1173_p8 }
  0x19   :  { %1181 = shalt.err (!%p1178_p10)
}
  0x1a   :  { %s1182_s18 = scalar_lea.vmem %s1316_s16, 1024  ;;  %p1187_p12 = scmp.lt.s32.totalorder %s1316_s16, %s1316_s16 }
  0x1b   :  { %p1183_p11 = scmp.ne.s32.totalorder %s1316_s16, %s1182_s18  ;;  %p1188_p13 = scmp.lt.s32.totalorder %s1182_s18, %s1182_s18 }
  0x1d   :  { %p1189_p0 = por %p1188_p13, %p1187_p12 }
  0x1f   :  { %p1190_p1 = pnand %p1189_p0, %p1183_p11 }
  0x21   :  { %1193 = shalt.err (!%p1190_p1)
}
  0x22   :  { %38 = dma.hbm_to_vmem [thread:$0]  %s1512_s4, 1024, %s1316_s16, [#allocation4], %s1246_s25, %s1246_s25, %s1247_s26  }
  0x23   :  { %s1248_s19 = smov [#allocation8]   ;;  %s1194_s23 = scalar_lea.hbm %s1516_s8, 1024 }
  0x24   :  { %s60_s20 = sshll.u32 %s1248_s19, 4  ;;  %p1195_p2 = scmp.ne.s32.totalorder %s1516_s8, %s1194_s23  ;;  %s61_s20 = int_to_ptr.vmem [resolvable:$true] %s60_s20 }
  0x25   :  { %p1198_p3 = scmp.lt.u32.totalorder %s1194_s23, %s1516_s8 }
  0x27   :  { %p1200_p4 = pnand %p1198_p3, %p1195_p2 }
  0x29   :  { %1203 = shalt.err (!%p1200_p4)
}
  0x2a   :  { %s1204_s30 = scalar_lea.vmem %s61_s20, 1024  ;;  %p1209_p6 = scmp.lt.s32.totalorder %s61_s20, %s61_s20 }
  0x2b   :  { %p1205_p5 = scmp.ne.s32.totalorder %s61_s20, %s1204_s30  ;;  %p1210_p7 = scmp.lt.s32.totalorder %s1204_s30, %s1204_s30 }
  0x2d   :  { %p1211_p8 = por %p1210_p7, %p1209_p6 }
  0x2f   :  { %p1212_p9 = pnand %p1211_p8, %p1205_p5 }
  0x31   :  { %1215 = shalt.err (!%p1212_p9)
}
  0x32   :  { %66 = dma.hbm_to_vmem [thread:$0]  %s1516_s8, 1024, %s61_s20, [#allocation7], %s1246_s25, %s1246_s25, %s1247_s26  }
  0x33   :  { %1238 = dma.done.wait [#allocation4], 1024  }
  0x34   :  { %1239 = vsyncadd [#allocation4], 4294966272 }
  0x35   :  { %1240 = dma.done.wait [#allocation7], 2048  }
  0x36   :  { %1241 = vsyncadd [#allocation7], 4294965248  ;;  %v1249_v0 = vmov 0.0   ;;  %vm1250_vm0 = vmmov 0   ;;  %v1251_v1 = vmov 0   ;;  %v1252_v2 = vmov 1  }
  0x37   :  { %998 = vmatprep.subr.bf16.mxu0 %v1249_v0  ;;  %1014 = vmatprep.mubr.msk.bf16.mxu0 %vm1250_vm0, %v1249_v0  ;;  %v1102_v3 = vld [vmem:[#allocation3] sm:$0xff]   ;;  %v1103_v4 = vld [vmem:[#allocation3 + $0x8] sm:$0xff]   ;;  %v1104_v5 = vld [vmem:[#allocation3 + $0x10] sm:$0xff]   ;;  %v1253_v12 = vmov 2   ;;  %v1254_v17 = vmov 33   ;;  %s1255_s17 = smov 96   ;;  %v302_v31 = vlaneseq  ;;  %v139_v59 = vstv %s1508_s0 }
  0x38   :  { %1093 = vset.pattern.permute.xlu1 %v1251_v1  ;;  %1094 = vset.pattern.permute.xlu0 %v1252_v2  ;;  %v1105_v6 = vld [vmem:[#allocation3 + $0x18] sm:$0xff]   ;;  %v80_v7 = vld [vmem:[%s1509_s1] sm:$0xff]  ;;  %v81_v8 = vld [vmem:[%s1509_s1 + $0x8] sm:$0xff]  ;;  %vm316_vm3 = vcmask 130048   ;;  %s1257_s23 = smov 112   ;;  %s1259_s27 = smov 124  }
  0x39   :  { %1024 = vmatprep.subr.bf16.mxu1 %v1249_v0  ;;  %1040 = vmatprep.mubr.msk.bf16.mxu1 %vm1250_vm0, %v1249_v0  ;;  %v1106_v9 = vld [vmem:[#allocation3 + $0x20] sm:$0xff]   ;;  %v1107_v10 = vld [vmem:[#allocation3 + $0x28] sm:$0xff]   ;;  %v1108_v11 = vld [vmem:[#allocation3 + $0x30] sm:$0xff]   ;;  %v303_v39 = vshrl.u32 %v302_v31, 7  ;;  %s1260_s29 = smov [#allocation9]  }
  0x3a   :  { %999 = vmatpush3.bf16.msra.mxu0 %v1102_v3  ;;  %87 = vperm.xlu1 %1093, %v80_v7   ;;  %v1109_v13 = vld [vmem:[#allocation3 + $0x38] sm:$0xff]   ;;  %v146_v14 = vld [vmem:[%s1511_s3] sm:$0xff]  ;;  %v147_v15 = vld [vmem:[%s1511_s3 + $0x8] sm:$0xff]  ;;  %s920_s30 = sshll.u32 %s1260_s29, 4  ;;  %s921_s30 = int_to_ptr.vmem [resolvable:$true] %s920_s30 }
  0x3b   :  { %1000 = vmatprep.subr.bf16.mxu0 %v1249_v0  ;;  %v148_v16 = vpack.c.bf16 %v147_v15, %v146_v14  ;;  %v930_v29 = vld [vmem:[%s1510_s2] ss:$0 sm:$0xff]  ;;  %v931_v30 = vld [vmem:[%s1510_s2 + $0x1] ss:$0 sm:$0xff]  ;;  %v932_v37 = vld [vmem:[%s1510_s2 + $0x2] ss:$0 sm:$0xff]  ;;  %p1221_p11 = scmp.lt.s32.totalorder %s921_s30, %s921_s30 }
  0x3c   :  { %v1406_v47 = vsub.s32 0, %v303_v39  ;;  %s1216_s4 = scalar_lea.vmem %s921_s30, 16 }
  0x3d   :  { %p1217_p10 = scmp.ne.s32.totalorder %s921_s30, %s1216_s4 }
  0x3e   :  { %1001 = vmatpush3.bf16.msra.mxu0 %v1103_v4  ;;  %92 = vperm.xlu1 %1093, %v81_v8  }
  0x3f   :  { %1002 = vmatprep.subr.bf16.mxu0 %v1249_v0 }
  0x42   :  { %1003 = vmatpush3.bf16.msra.mxu0 %v1104_v5  ;;  %1095 = vset.pattern.permute.xlu1 %v1252_v2 }
  0x43   :  { %1004 = vmatprep.subr.bf16.mxu0 %v1249_v0  ;;  %106 = vperm.xlu1 %1095, %v81_v8  }
  0x46   :  { %1005 = vmatpush3.bf16.msra.mxu0 %v1105_v6 }
  0x47   :  { %1006 = vmatprep.subr.bf16.mxu0 %v1249_v0  ;;  %1096 = vset.pattern.permute.xlu1 %v1253_v12 }
  0x48   :  { %116 = vperm.xlu1 %1096, %v80_v7  }
  0x4a   :  { %1007 = vmatpush3.bf16.msra.mxu0 %v1106_v9 }
  0x4b   :  { %1008 = vmatprep.subr.bf16.mxu0 %v1249_v0 }
  0x4c   :  { %1098 = vset.pattern.permute.xlu1 %v1254_v17 }
  0x4e   :  { %1009 = vmatpush3.bf16.msra.mxu0 %v1107_v10 }
  0x4f   :  { %1010 = vmatprep.subr.bf16.mxu0 %v1249_v0 }
  0x52   :  { %1011 = vmatpush3.bf16.msra.mxu0 %v1108_v11 }
  0x53   :  { %1012 = vmatprep.subr.bf16.mxu0 %v1249_v0 }
  0x56   :  { %1013 = vmatpush3.bf16.msra.mxu0 %v1109_v13 }
  0x57   :  { %1018 = vmatprep.subr.bf16.mxu0 %v1249_v0 }
  0x59   :  { %1015 = vmatmul.mubr.bf16.vlgmr.msra.gmra.mrb[0].mxu0 %v148_v16 }
  0x5a   :  { %1020 = vmatprep.mubr.msk.bf16.mxu0 %vm1250_vm0, %v1249_v0 }
  0xb9   :  { %v88_v25 = vpop.permute.xlu1 %87 }
  0xba   :  { %v99_v32 = vsub.f32 %v88_v25, %v930_v29  ;;  %v1112_v25 = vld [vmem:[#allocation6 + $0x10] sm:$0xff]  }
  0xbc   :  { %v129_v40 = vmul.f32 %v99_v32, %v99_v32 }
  0xbd   :  { %v93_v26 = vpop.permute.xlu1 %92 }
  0xbe   :  { %v100_v33 = vsub.f32 %v93_v26, %v930_v29  ;;  %v1113_v26 = vld [vmem:[#allocation6 + $0x18] sm:$0xff]  }
  0xc0   :  { %v130_v41 = vmul.f32 %v100_v33, %v100_v33 }
  0xc2   :  { %v107_v27 = vpop.permute.xlu1 %106 }
  0xc3   :  { %v114_v35 = vsub.f32 %v107_v27, %v931_v30  ;;  %v1114_v27 = vld [vmem:[#allocation6 + $0x20] sm:$0xff]  }
  0xc5   :  { %v132_v42 = vmul.f32 %v114_v35, %v114_v35 }
  0xc7   :  { %v117_v34 = vpop.permute.xlu1 %116  ;;  %v134_v48 = vadd.f32 %v132_v42, %v130_v41 }
  0xc8   :  { %v127_v43 = vsub.f32 %v117_v34, %v932_v37 }
  0xca   :  { %v135_v49 = vmul.f32 %v127_v43, %v127_v43 }
 0x12c   :  { %v247_v18 = vpop.f32.mrb[0].mxu0 }
 0x12d   :  { %256 = vrot.lane.b32.xlu0 %v247_v18, %s1255_s17  ;;  %v1016_v19 = vpop.f32.mrb[1].mxu0  ;;  %295 = vperm.xlu1 %1098, %v247_v18  }
 0x12e   :  { %v250_v20 = vpop.f32.mrb[2].mxu0 }
 0x12f   :  { %v344_v21 = vpack.c.bf16 %v250_v20, %v247_v18  ;;  %v1017_v22 = vpop.f32.mrb[3].mxu0 }
 0x131   :  { %258 = vrot.lane.b32.xlu0 %v250_v20, %s1255_s17  ;;  %1019 = vmatpush3.bf16.msra.mxu0 %v344_v21 }
 0x132   :  { %299 = vperm.xlu1 %1098, %v250_v20   ;;  %1044 = vmatprep.subr.bf16.mxu0 %v1249_v0 }
 0x135   :  { %102 = vperm.xlu0 %1094, %v80_v7  }
 0x139   :  { %1097 = vset.pattern.permute.xlu0 %v1253_v12 }
 0x13a   :  { %120 = vperm.xlu0 %1097, %v81_v8  }
 0x19f   :  { %v257_v23 = vpop.permute.xlu0 %256 }
 0x1a0   :  { %262 = vxpose.xlu0.b32.start [1/2] (short) (narrow) %v257_v23, 8  ;;  %v1110_v23 = vld [vmem:[#allocation6] sm:$0xff]  }
 0x1a1   :  { %1025 = vmatpush3.bf16.msra.mxu1 %v1110_v23 }
 0x1a2   :  { %1026 = vmatprep.subr.bf16.mxu1 %v1249_v0 }
 0x1a3   :  { %v259_v24 = vpop.permute.xlu0 %258 }
 0x1a4   :  { %263 = vxpose.xlu0.b32.end [2/2] (short) (narrow) %v259_v24, 8  ;;  %v1111_v24 = vld [vmem:[#allocation6 + $0x8] sm:$0xff]  }
 0x1a5   :  { %1027 = vmatpush3.bf16.msra.mxu1 %v1111_v24 }
 0x1a6   :  { %1028 = vmatprep.subr.bf16.mxu1 %v1249_v0 }
 0x1a9   :  { %1029 = vmatpush3.bf16.msra.mxu1 %v1112_v25 }
 0x1aa   :  { %1030 = vmatprep.subr.bf16.mxu1 %v1249_v0 }
 0x1ac   :  { %v296_v46 = vpop.permute.xlu1 %295 }
 0x1ad   :  { %1031 = vmatpush3.bf16.msra.mxu1 %v1113_v26  ;;  %v1118_v26 = vld [vmem:[#allocation8] sm:$0xff]  }
 0x1ae   :  { %1032 = vmatprep.subr.bf16.mxu1 %v1249_v0 }
 0x1b1   :  { %v300_v54 = vpop.permute.xlu1 %299  ;;  %1033 = vmatpush3.bf16.msra.mxu1 %v1114_v27  ;;  %v1119_v27 = vld [vmem:[#allocation8 + $0x8] sm:$0xff]  }
 0x1b2   :  { %1034 = vmatprep.subr.bf16.mxu1 %v1249_v0 }
 0x1b4   :  { %v103_v28 = vpop.permute.xlu0 %102 }
 0x1b5   :  { %v113_v36 = vsub.f32 %v103_v28, %v931_v30  ;;  %v1115_v28 = vld [vmem:[#allocation6 + $0x28] sm:$0xff]  }
 0x1b6   :  { %1035 = vmatpush3.bf16.msra.mxu1 %v1115_v28  ;;  %v1120_v28 = vld [vmem:[#allocation8 + $0x10] sm:$0xff]  }
 0x1b7   :  { %v131_v44 = vmul.f32 %v113_v36, %v113_v36  ;;  %1036 = vmatprep.subr.bf16.mxu1 %v1249_v0  ;;  %v1116_v36 = vld [vmem:[#allocation6 + $0x30] sm:$0xff]  }
 0x1b9   :  { %v121_v38 = vpop.permute.xlu0 %120  ;;  %v133_v50 = vadd.f32 %v131_v44, %v129_v40 }
 0x1ba   :  { %v128_v45 = vsub.f32 %v121_v38, %v932_v37  ;;  %1037 = vmatpush3.bf16.msra.mxu1 %v1116_v36  ;;  %v1117_v37 = vld [vmem:[#allocation6 + $0x38] sm:$0xff]   ;;  %v943_v38 = vld [vmem:[%s1513_s5] ss:$0 sm:$0xff] }
 0x1bb   :  { %v137_v55 = vadd.f32 %v135_v49, %v133_v50  ;;  %1038 = vmatprep.subr.bf16.mxu1 %v1249_v0  ;;  %v1256_v49 = vmov 17  }
 0x1bc   :  { %v136_v51 = vmul.f32 %v128_v45, %v128_v45  ;;  %1099 = vset.pattern.permute.xlu1 %v1256_v49 }
 0x1bd   :  { %vm1416_vm5 = vcmp.lt.f32.partialorder %v137_v55, %v139_v59 }
 0x1be   :  { %v138_v56 = vadd.f32 %v136_v51, %v134_v48  ;;  %v1429_v17 = vsel %vm1416_vm5, 1.0, %v1249_v0  ;;  %1039 = vmatpush3.bf16.msra.mxu1 %v1117_v37 }
 0x1bf   :  { %1050 = vmatprep.subr.bf16.mxu1 %v1249_v0 }
 0x1c0   :  { %vm1412_vm4 = vcmp.lt.f32.partialorder %v138_v56, %v139_v59 }
 0x1c1   :  { %v1435_v19 = vsel %vm1412_vm4, 1.0, %v1249_v0 }
 0x220   :  { %v278_v52 = vpop.trf.xlu0 }
 0x221   :  { %v305_v53 = vrot.slane %v278_v52, %v1406_v47 }
 0x223   :  { %v306_v57 = vadd.f32 %v305_v53, %v296_v46  ;;  %v307_v58 = vadd.f32 %v305_v53, %v300_v54 }
 0x225   :  { %vm308_vm1 = vcmp.gt.f32.partialorder %v306_v57, 0.0  ;;  %v310_v60 = vmul.f32 0.2, %v306_v57  ;;  %vm309_vm2 = vcmp.gt.f32.partialorder %v307_v58, 0.0  ;;  %v311_v61 = vmul.f32 0.2, %v307_v58 }
 0x227   :  { %v312_v1 = vsel %vm308_vm1, %v306_v57, %v310_v60  ;;  %v313_v2 = vsel %vm309_vm2, %v307_v58, %v311_v61 }
 0x228   :  { %v314_v3 = vsel %vm1416_vm5, %v312_v1, -inf  ;;  %v315_v4 = vsel %vm1412_vm4, %v313_v2, -inf }
 0x229   :  { %v317_v5 = vsel %vm316_vm3, %v314_v3, -inf  ;;  %v320_v6 = vsel %vm316_vm3, %v315_v4, -inf }
 0x22a   :  { %318 = vmax.xlane.f32.xlu1 %v317_v5  ;;  %321 = vmax.xlane.f32.xlu0 %v320_v6 }
 0x2b7   :  { %v322_v7 = vpop.xlane.xlu0 %321  ;;  %v319_v8 = vpop.xlane.xlu1 %318 }
 0x2b8   :  { %v324_v9 = vsub.f32 %v313_v2, %v322_v7  ;;  %v323_v10 = vsub.f32 %v312_v1, %v319_v8 }
 0x2ba   :  { %v326_v11 = vmin.f32 %v324_v9, 0.0  ;;  %v325_v12 = vmin.f32 %v323_v10, 0.0 }
 0x2bc   :  { %v329_v13 = vmul.f32 1.442695, %v326_v11  ;;  %v327_v14 = vmul.f32 1.442695, %v325_v12 }
 0x2be   :  { %1126 = vpow2.f32 %v329_v13 }
 0x2bf   :  { %1128 = vpow2.f32 %v327_v14 }
 0x2c8   :  { %v1127_v15 = vpop.eup %1126 }
 0x2c9   :  { %v1129_v16 = vpop.eup %1128  ;;  %v332_v21 = vmul.f32 %v1127_v15, %v1435_v19 }
 0x2ca   :  { %v331_v18 = vmul.f32 %v1129_v16, %v1429_v17 }
 0x2cb   :  { %v336_v22 = vsel %vm316_vm3, %v332_v21, 0.0 }
 0x2cc   :  { %v333_v20 = vsel %vm316_vm3, %v331_v18, 0.0 }
 0x2cd   :  { %334 = vadd.xlane.f32.xlu1 %v333_v20 }
 0x2d1   :  { %337 = vadd.xlane.f32.xlu1 %v336_v22 }
 0x35a   :  { %v335_v29 = vpop.xlane.xlu1 %334 }
 0x35b   :  { %1130 = vrcp.f32 %v335_v29  ;;  %v1121_v29 = vld [vmem:[#allocation8 + $0x18] sm:$0xff]  }
 0x35e   :  { %v338_v30 = vpop.xlane.xlu1 %337 }
 0x35f   :  { %1132 = vrcp.f32 %v338_v30  ;;  %v1122_v30 = vld [vmem:[#allocation8 + $0x20] sm:$0xff]  }
 0x365   :  { %v1131_v31 = vpop.eup %1130 }
 0x366   :  { %v341_v33 = vmul.f32 %v1131_v31, %v331_v18  ;;  %v1123_v31 = vld [vmem:[#allocation8 + $0x28] sm:$0xff]  }
 0x369   :  { %v1133_v32 = vpop.eup %1132 }
 0x36a   :  { %v342_v34 = vmul.f32 %v1133_v32, %v332_v21 }
 0x36c   :  { %v343_v35 = vpack.c.bf16 %v342_v34, %v341_v33 }
 0x36e   :  { %1021 = vmatmul.mubr.msk.bf16.vlgmr.msra.gmra.mrb[4].mxu0 %vm316_vm3, %v343_v35 }
 0x36f   :  { %1046 = vmatprep.mubr.msk.bf16.mxu0 %vm1250_vm0, %v1249_v0 }
 0x441   :  { %v389_v39 = vpop.f32.mrb[4].mxu0 }
 0x442   :  { %v390_v40 = vadd.f32 %v943_v38, %v389_v39  ;;  %v1022_v41 = vpop.f32.mrb[5].mxu0  ;;  %v1124_v39 = vld [vmem:[#allocation8 + $0x30] sm:$0xff]  }
 0x443   :  { %v392_v42 = vpop.f32.mrb[6].mxu0  ;;  %v1258_v41 = vmov 5  }
 0x444   :  { %v393_v43 = vadd.f32 %v943_v38, %v392_v42  ;;  %v1023_v44 = vpop.f32.mrb[7].mxu0  ;;  %v396_v45 = vmax.f32 %v390_v40, 0.0  ;;  %v1125_v40 = vld [vmem:[#allocation8 + $0x38] sm:$0xff]   ;;  %1101 = vset.pattern.permute.xlu0 %v1258_v41  ;;  %v953_v42 = vld [vmem:[%s1515_s7] ss:$0 sm:$0xff] }
 0x446   :  { %v397_v46 = vmax.f32 %v393_v43, 0.0 }
 0x448   :  { %v398_v48 = vpack.c.bf16 %v397_v46, %v396_v45 }
 0x44a   :  { %1041 = vmatmul.mubr.bf16.vlgmr.msra.gmra.mrb[0].mxu1 %v398_v48 }
 0x44b   :  { %1066 = vmatprep.mubr.msk.bf16.mxu1 %vm1250_vm0, %v1249_v0  ;;  %1051 = vmatpush3.bf16.msra.mxu1 %v1118_v26 }
 0x44c   :  { %1052 = vmatprep.subr.bf16.mxu1 %v1249_v0 }
 0x44f   :  { %1053 = vmatpush3.bf16.msra.mxu1 %v1119_v27 }
 0x450   :  { %1054 = vmatprep.subr.bf16.mxu1 %v1249_v0 }
 0x453   :  { %1055 = vmatpush3.bf16.msra.mxu1 %v1120_v28 }
 0x454   :  { %1056 = vmatprep.subr.bf16.mxu1 %v1249_v0 }
 0x457   :  { %1057 = vmatpush3.bf16.msra.mxu1 %v1121_v29 }
 0x458   :  { %1058 = vmatprep.subr.bf16.mxu1 %v1249_v0 }
 0x45b   :  { %1059 = vmatpush3.bf16.msra.mxu1 %v1122_v30 }
 0x45c   :  { %1060 = vmatprep.subr.bf16.mxu1 %v1249_v0 }
 0x45f   :  { %1061 = vmatpush3.bf16.msra.mxu1 %v1123_v31 }
 0x460   :  { %1062 = vmatprep.subr.bf16.mxu1 %v1249_v0 }
 0x463   :  { %1063 = vmatpush3.bf16.msra.mxu1 %v1124_v39 }
 0x464   :  { %1064 = vmatprep.subr.bf16.mxu1 %v1249_v0 }
 0x467   :  { %1065 = vmatpush3.bf16.msra.mxu1 %v1125_v40 }
 0x51d   :  { %v497_v50 = vpop.f32.mrb[0].mxu1 }
 0x51e   :  { %506 = vrot.lane.b32.xlu1 %v497_v50, %s1257_s23  ;;  %v1042_v51 = vpop.f32.mrb[1].mxu1 }
 0x51f   :  { %v500_v52 = vpop.f32.mrb[2].mxu1 }
 0x520   :  { %v593_v53 = vpack.c.bf16 %v500_v52, %v497_v50  ;;  %v1043_v54 = vpop.f32.mrb[3].mxu1 }
 0x522   :  { %508 = vrot.lane.b32.xlu1 %v500_v52, %s1257_s23  ;;  %1045 = vmatpush3.bf16.msra.mxu0 %v593_v53 }
 0x523   :  { %1070 = vmatprep.subr.bf16.mxu0 %v1249_v0 }
 0x526   :  { %545 = vperm.xlu1 %1099, %v497_v50  }
 0x52a   :  { %549 = vperm.xlu1 %1099, %v500_v52  }
 0x590   :  { %v507_v55 = vpop.permute.xlu1 %506 }
 0x591   :  { %512 = vxpose.xlu1.b32.start [1/2] (short) (narrow) %v507_v55, 8 }
 0x594   :  { %v509_v56 = vpop.permute.xlu1 %508 }
 0x595   :  { %513 = vxpose.xlu1.b32.end [2/2] (short) (narrow) %v509_v56, 8 }
 0x5a5   :  { %v546_v57 = vpop.permute.xlu1 %545 }
 0x5a9   :  { %v550_v58 = vpop.permute.xlu1 %549 }
 0x5b3   :  { %1100 = vset.pattern.permute.xlu1 %v1258_v41 }
 0x611   :  { %v528_v59 = vpop.trf.xlu1 }
 0x612   :  { %v555_v60 = vrot.slane %v528_v59, %v1406_v47 }
 0x614   :  { %v556_v61 = vadd.f32 %v555_v60, %v546_v57  ;;  %v557_v1 = vadd.f32 %v555_v60, %v550_v58 }
 0x616   :  { %vm558_vm6 = vcmp.gt.f32.partialorder %v556_v61, 0.0  ;;  %v560_v2 = vmul.f32 0.2, %v556_v61  ;;  %vm559_vm7 = vcmp.gt.f32.partialorder %v557_v1, 0.0  ;;  %v561_v3 = vmul.f32 0.2, %v557_v1 }
 0x618   :  { %v562_v4 = vsel %vm558_vm6, %v556_v61, %v560_v2  ;;  %v563_v5 = vsel %vm559_vm7, %v557_v1, %v561_v3 }
 0x619   :  { %v564_v6 = vsel %vm1416_vm5, %v562_v4, -inf  ;;  %v565_v8 = vsel %vm1412_vm4, %v563_v5, -inf }
 0x61a   :  { %v566_v7 = vsel %vm316_vm3, %v564_v6, -inf  ;;  %v569_v9 = vsel %vm316_vm3, %v565_v8, -inf }
 0x61b   :  { %567 = vmax.xlane.f32.xlu0 %v566_v7 }
 0x61f   :  { %570 = vmax.xlane.f32.xlu0 %v569_v9 }
 0x6a8   :  { %v568_v10 = vpop.xlane.xlu0 %567 }
 0x6a9   :  { %v572_v11 = vsub.f32 %v562_v4, %v568_v10 }
 0x6ab   :  { %v574_v12 = vmin.f32 %v572_v11, 0.0 }
 0x6ac   :  { %v571_v13 = vpop.xlane.xlu0 %570 }
 0x6ad   :  { %v576_v14 = vmul.f32 1.442695, %v574_v12  ;;  %v573_v15 = vsub.f32 %v563_v5, %v571_v13 }
 0x6af   :  { %1134 = vpow2.f32 %v576_v14  ;;  %v575_v16 = vmin.f32 %v573_v15, 0.0 }
 0x6b1   :  { %v578_v18 = vmul.f32 1.442695, %v575_v16 }
 0x6b3   :  { %1136 = vpow2.f32 %v578_v18 }
 0x6b9   :  { %v1135_v20 = vpop.eup %1134 }
 0x6ba   :  { %v580_v21 = vmul.f32 %v1135_v20, %v1429_v17 }
 0x6bc   :  { %v582_v22 = vsel %vm316_vm3, %v580_v21, 0.0 }
 0x6bd   :  { %v1137_v23 = vpop.eup %1136  ;;  %583 = vadd.xlane.f32.xlu0 %v582_v22 }
 0x6be   :  { %v581_v24 = vmul.f32 %v1137_v23, %v1435_v19 }
 0x6c0   :  { %v585_v25 = vsel %vm316_vm3, %v581_v24, 0.0 }
 0x6c1   :  { %586 = vadd.xlane.f32.xlu0 %v585_v25 }
 0x74a   :  { %v584_v32 = vpop.xlane.xlu0 %583 }
 0x74b   :  { %1138 = vrcp.f32 %v584_v32 }
 0x74e   :  { %v587_v33 = vpop.xlane.xlu0 %586 }
 0x74f   :  { %1140 = vrcp.f32 %v587_v33 }
 0x755   :  { %v1139_v34 = vpop.eup %1138 }
 0x756   :  { %v590_v36 = vmul.f32 %v1139_v34, %v580_v21 }
 0x759   :  { %v1141_v35 = vpop.eup %1140 }
 0x75a   :  { %v591_v37 = vmul.f32 %v1141_v35, %v581_v24 }
 0x75c   :  { %v592_v38 = vpack.c.bf16 %v591_v37, %v590_v36 }
 0x75e   :  { %1047 = vmatmul.mubr.msk.bf16.vlgmr.msra.gmra.mrb[8].mxu0 %vm316_vm3, %v592_v38 }
 0x75f   :  { %1072 = vmatprep.mubr.msk.bf16.mxu0 %vm1250_vm0, %v1249_v0 }
 0x831   :  { %v638_v43 = vpop.f32.mrb[8].mxu0 }
 0x832   :  { %v639_v44 = vadd.f32 %v953_v42, %v638_v43  ;;  %v1048_v45 = vpop.f32.mrb[9].mxu0 }
 0x833   :  { %v641_v46 = vpop.f32.mrb[10].mxu0 }
 0x834   :  { %v642_v48 = vadd.f32 %v953_v42, %v641_v46  ;;  %v1049_v49 = vpop.f32.mrb[11].mxu0  ;;  %v645_v50 = vmax.f32 %v639_v44, 0.0 }
 0x836   :  { %v646_v51 = vmax.f32 %v642_v48, 0.0 }
 0x838   :  { %v647_v52 = vpack.c.bf16 %v646_v51, %v645_v50 }
 0x83a   :  { %1067 = vmatmul.mubr.bf16.vlgmr.msra.gmra.mrb[4].mxu1 %v647_v52 }
 0x90d   :  { %v746_v0 = vpop.f32.mrb[4].mxu1 }
 0x90e   :  { %794 = vperm.xlu1 %1100, %v746_v0   ;;  %755 = vrot.lane.b32.xlu0 %v746_v0, %s1259_s27  ;;  %v1068_v53 = vpop.f32.mrb[5].mxu1 }
 0x90f   :  { %v749_v54 = vpop.f32.mrb[6].mxu1 }
 0x910   :  { %v842_v55 = vpack.c.bf16 %v749_v54, %v746_v0  ;;  %v1069_v56 = vpop.f32.mrb[7].mxu1 }
 0x912   :  { %757 = vrot.lane.b32.xlu0 %v749_v54, %s1259_s27  ;;  %1071 = vmatpush3.bf16.msra.mxu0 %v842_v55 }
 0x916   :  { %798 = vperm.xlu0 %1101, %v749_v54  }
 0x980   :  { %v756_v57 = vpop.permute.xlu0 %755 }
 0x981   :  { %761 = vxpose.xlu0.b32.start [1/2] (short) (narrow) %v756_v57, 8 }
 0x984   :  { %v758_v58 = vpop.permute.xlu0 %757 }
 0x985   :  { %762 = vxpose.xlu0.b32.end [2/2] (short) (narrow) %v758_v58, 8 }
 0x98d   :  { %v795_v1 = vpop.permute.xlu1 %794 }
 0x995   :  { %v799_v59 = vpop.permute.xlu0 %798 }
 0xa01   :  { %v777_v60 = vpop.trf.xlu0 }
 0xa02   :  { %v804_v61 = vrot.slane %v777_v60, %v1406_v47 }
 0xa04   :  { %v805_v2 = vadd.f32 %v804_v61, %v795_v1  ;;  %v806_v3 = vadd.f32 %v804_v61, %v799_v59 }
 0xa06   :  { %vm808_vm8 = vcmp.gt.f32.partialorder %v806_v3, 0.0  ;;  %v810_v4 = vmul.f32 0.2, %v806_v3  ;;  %vm807_vm9 = vcmp.gt.f32.partialorder %v805_v2, 0.0  ;;  %v809_v5 = vmul.f32 0.2, %v805_v2 }
 0xa08   :  { %v812_v6 = vsel %vm808_vm8, %v806_v3, %v810_v4  ;;  %v811_v7 = vsel %vm807_vm9, %v805_v2, %v809_v5 }
 0xa09   :  { %v814_v8 = vsel %vm1412_vm4, %v812_v6, -inf  ;;  %v813_v9 = vsel %vm1416_vm5, %v811_v7, -inf }
 0xa0a   :  { %v818_v10 = vsel %vm316_vm3, %v814_v8, -inf  ;;  %v815_v11 = vsel %vm316_vm3, %v813_v9, -inf }
 0xa0b   :  { %819 = vmax.xlane.f32.xlu0 %v818_v10  ;;  %816 = vmax.xlane.f32.xlu1 %v815_v11 }
 0xa98   :  { %v820_v47 = vpop.xlane.xlu0 %819  ;;  %v817_v12 = vpop.xlane.xlu1 %816 }
 0xa99   :  { %v822_v13 = vsub.f32 %v812_v6, %v820_v47  ;;  %v821_v14 = vsub.f32 %v811_v7, %v817_v12 }
 0xa9b   :  { %v824_v15 = vmin.f32 %v822_v13, 0.0  ;;  %v823_v16 = vmin.f32 %v821_v14, 0.0 }
 0xa9d   :  { %v827_v18 = vmul.f32 1.442695, %v824_v15  ;;  %v825_v20 = vmul.f32 1.442695, %v823_v16 }
 0xa9f   :  { %1142 = vpow2.f32 %v827_v18 }
 0xaa0   :  { %1144 = vpow2.f32 %v825_v20 }
 0xaa9   :  { %v1143_v62 = vpop.eup %1142 }
 0xaaa   :  { %v1145_v21 = vpop.eup %1144  ;;  %v830_v23 = vmul.f32 %v1143_v62, %v1435_v19 }
 0xaab   :  { %v829_v63 = vmul.f32 %v1145_v21, %v1429_v17  ;;  %v963_v17 = vld [vmem:[%s1517_s9] ss:$0 sm:$0xff]  ;;  %s1220_s9 = scalar_lea.vmem %s921_s30, 32 }
 0xaac   :  { %v834_v24 = vsel %vm316_vm3, %v830_v23, 0.0  ;;  %p1222_p12 = scmp.lt.s32.totalorder %s1220_s9, %s1216_s4 }
 0xaad   :  { %v831_v22 = vsel %vm316_vm3, %v829_v63, 0.0 }
 0xaae   :  { %832 = vadd.xlane.f32.xlu1 %v831_v22  ;;  %p1223_p13 = por %p1222_p12, %p1221_p11 }
 0xab0   :  { %p1224_p0 = pnand %p1223_p13, %p1217_p10 }
 0xab2   :  { %835 = vadd.xlane.f32.xlu1 %v834_v24 }
 0xb3b   :  { %v833_v25 = vpop.xlane.xlu1 %832 }
 0xb3c   :  { %1146 = vrcp.f32 %v833_v25 }
 0xb3f   :  { %v836_v26 = vpop.xlane.xlu1 %835 }
 0xb40   :  { %1148 = vrcp.f32 %v836_v26 }
 0xb46   :  { %v1147_v27 = vpop.eup %1146 }
 0xb47   :  { %v839_v29 = vmul.f32 %v1147_v27, %v829_v63 }
 0xb4a   :  { %v1149_v28 = vpop.eup %1148 }
 0xb4b   :  { %v840_v30 = vmul.f32 %v1149_v28, %v830_v23 }
 0xb4d   :  { %v841_v31 = vpack.c.bf16 %v840_v30, %v839_v29 }
 0xb4f   :  { %1073 = vmatmul.mubr.msk.bf16.vlgmr.msra.gmra.mrb[12].mxu0 %vm316_vm3, %v841_v31 }
 0xc22   :  { %v887_v19 = vpop.f32.mrb[12].mxu0 }
 0xc23   :  { %v1074_v32 = vpop.f32.mrb[13].mxu0  ;;  %v888_v34 = vadd.f32 %v963_v17, %v887_v19 }
 0xc24   :  { %v890_v33 = vpop.f32.mrb[14].mxu0 }
 0xc25   :  { %v891_v35 = vadd.f32 %v963_v17, %v890_v33  ;;  %v1075_v36 = vpop.f32.mrb[15].mxu0 }
 0xc27   :  { %v905_v37 = vadd.f32 %v891_v35, %v888_v34 }
 0xc29   :  { %v906_v38 = vrot.slane %v905_v37, 4 }
 0xc2b   :  { %v907_v39 = vadd.f32 %v906_v38, %v905_v37 }
 0xc2d   :  { %v908_v40 = vrot.slane %v907_v39, 2 }
 0xc2f   :  { %v909_v41 = vadd.f32 %v908_v40, %v907_v39 }
 0xc31   :  { %v910_v42 = vrot.slane %v909_v41, 1 }
 0xc33   :  { %v911_v43 = vadd.f32 %v910_v42, %v909_v41 }
 0xc35   :  { %v912_v44 = vmul.f32 0.0625, %v911_v43 }
 0xc37   :  { %913 = vst [vmem:[#allocation9] sm:$0x1] %v912_v44 }
 0xc38   :  { %1227 = shalt.err (!%p1224_p0)
}
 0xc39   :  { %s1228_s25 = scalar_lea.hbm %s1518_s10, 16 }
 0xc3a   :  { %p1229_p1 = scmp.ne.s32.totalorder %s1518_s10, %s1228_s25  ;;  %p1232_p2 = scmp.lt.u32.totalorder %s1228_s25, %s1518_s10 }
 0xc3c   :  { %p1234_p3 = pnand %p1232_p2, %p1229_p1 }
 0xc3e   :  { %1237 = shalt.err (!%p1234_p3)
}
 0xc3f   :  { %923 = dma.vmem_to_hbm [thread:$0]  %s921_s30, 16, %s1518_s10, [#allocation5]  }
 0xc40   :  { %1242 = dma.done.wait [#allocation5], 16  }
 0xc41   :  { %1243 = vsyncadd [#allocation5], 4294967280 }
 0xc42   :  { %927 = vsyncpa [#allocation4], 1 }
 0xc43   :  { %928 = vsyncpa [#allocation7], 1 }
 0xc44   :  { %929 = vsyncpa [#allocation5], 1 }

</bundles_post_ra>
